<compile_context>
chip_gen: v5e
topology: v5e:2x2
jax: 0.10.0
libtpu: 0.0.40
codegen_flags: <defaults>
</compile_context>

<pallas_src>
import functools

import jax
import jax.numpy as jnp
from jax.experimental import pallas as pl
from jax.experimental.pallas import tpu as pltpu


# ------------------------------- fused kernel ------------------------------- #

def _sage_direct_kernel(a_hbm, x_ref, gamma_ref, ni_ref, nj_ref, *rest,
                        num_layers, decode_type, compute_dtype):
    wb_refs = rest[:3 * num_layers]          # (w_l, w_r, b) per layer
    o_ref = rest[3 * num_layers]             # (P, 1) f32 output
    a_vmem, dma_sem = rest[3 * num_layers + 1:]

    # --- adjacency: single-buffered explicit DMA (one copy, not two) ---------
    cp = pltpu.make_async_copy(a_hbm, a_vmem, dma_sem)
    cp.start()

    x = x_ref[...]                                                 # (N, C0)
    # Layer-0 root term does not need the adjacency: overlap it with the DMA.
    h_root = jnp.dot(x, wb_refs[1][...], preferred_element_type=jnp.float32)

    cp.wait()
    a = a_vmem[...]                                                # (N, N)

    # --- degree normalisation: XLU row-sum with f32 accumulation -------------
    deg = jnp.sum(a.astype(jnp.float32), axis=-1, keepdims=True)   # (N, 1)
    deg_inv = jnp.where(deg > 0.0, 1.0 / jnp.maximum(deg, 1.0), 0.0)

    # --- layers, fully unrolled; activations stay on-chip --------------------
    h = None
    for li in range(num_layers):
        w_l = wb_refs[3 * li]                                      # (C_in, C_out)
        w_r = wb_refs[3 * li + 1]                                  # (C_in, C_out)
        b_l = wb_refs[3 * li + 2]                                  # (1, C_out) f32
        if li > 0:
            h_root = jnp.dot(x, w_r[...], preferred_element_type=jnp.float32)
        # mean aggregation: (A @ x) * 1/deg  (scale in f32)
        agg = jnp.dot(a, x, preferred_element_type=jnp.float32) * deg_inv
        h = (jnp.dot(agg.astype(compute_dtype), w_l[...],
                     preferred_element_type=jnp.float32)
             + h_root + b_l[...])                                  # (N, C_out) f32
        if li < num_layers - 1:
            # ReLU; F.dropout(training=False) is identity at inference.
            x = jnp.maximum(h, 0.0).astype(compute_dtype)

    # --- fused decode: one-hot MXU gather of the pair rows (exact in f32) ----
    n = a_vmem.shape[0]
    p = ni_ref.shape[0]
    col = jax.lax.broadcasted_iota(jnp.int32, (p, n), 1)           # (P, N)
    sel_i = jnp.where(col == ni_ref[...], 1.0, 0.0)                # (P, N) f32
    sel_j = jnp.where(col == nj_ref[...], 1.0, 0.0)
    xi = jnp.dot(sel_i, h, preferred_element_type=jnp.float32)     # (P, C_out)
    xj = jnp.dot(sel_j, h, preferred_element_type=jnp.float32)

    if decode_type == "dist":
        d = xi - xj
        nrm = jnp.sqrt(jnp.sum(d * d, axis=-1, keepdims=True))
        o_ref[...] = gamma_ref[...] - nrm                          # (P, 1)
    else:
        o_ref[...] = jnp.sum(xi * xj, axis=-1, keepdims=True)      # (P, 1)
    # TODO(synk): for large P, emit a lane-dense (1, P) output (pairs on the
    # lane axis) instead of this (P, 1) column to avoid masked partial stores,
    # and pad channel widths to multiples of 128 at trace time.


# ------------------------------ Pallas wrapper ------------------------------ #

def _vmem_budget_bytes():
    """Generation-aware VMEM budget: ~96 MiB on v5e/v6e (128 MiB physical),
    ~48 MiB on v7x (64 MiB per TensorCore)."""
    try:
        cap = int(pltpu.get_tpu_info().vmem_capacity_bytes)
    except Exception:
        cap = 64 * 1024 * 1024          # conservative fallback (v7x per-TC)
    return (cap * 3) // 4               # headroom for compiler temporaries


def sage_direct_forward(params, x, adj, node_i, node_j, decode_type=None,
                        compute_dtype=jnp.bfloat16):
    """Fused SAGE_Direct forward.

    `adj` must be a binary 0/1 adjacency. The default compute_dtype=bfloat16
    keeps MXU operands in bf16 with f32 accumulation (bias/ReLU/normalisation/
    decode in f32): this is a *tolerance* guarantee vs. the f32 PyTorch module.
    Pass compute_dtype=jnp.float32 for exact original-module semantics.
    """
    layers = params["layers"]
    num_layers = len(layers)
    n = x.shape[0]
    p = node_i.shape[0]
    c_out = layers[-1][0].shape[1]
    c_max = max([x.shape[1]] + [w_l.shape[1] for (w_l, _, _) in layers])

    a_cd = adj.astype(compute_dtype)         # 0/1 adjacency is exact in bf16
    x_cd = x.astype(compute_dtype)
    gamma2d = jnp.asarray(params["gamma"], jnp.float32).reshape(1, 1)
    ni = node_i.astype(jnp.int32).reshape(p, 1)
    nj = node_j.astype(jnp.int32).reshape(p, 1)

    w_list = [(w_l.astype(compute_dtype), w_r.astype(compute_dtype))
              for (w_l, _, w_r) in layers]
    b_list = [b_l.astype(jnp.float32).reshape(1, -1) for (_, b_l, _) in layers]

    # --- generation-aware resident-VMEM check --------------------------------
    # adjacency is single-buffered (scratch); small auto-pipelined operands are
    # double-buffered; per-layer f32 temporaries and decode temporaries counted.
    itemsize = jnp.dtype(compute_dtype).itemsize
    budget = _vmem_budget_bytes()
    resident = n * n * itemsize                                      # adjacency scratch
    resident += 2 * x_cd.size * itemsize                             # x (2 buffers)
    resident += 2 * sum(wl.size + wr.size for (wl, wr) in w_list) * itemsize
    resident += 2 * sum(b.size for b in b_list) * 4
    resident += 2 * (2 * p + 1 + p) * 4                              # ni, nj, gamma, out
    resident += (3 * n * c_max + n) * 4 + n * c_max * itemsize       # agg/h_root/h/relu, deg
    resident += 2 * (p * n + p * c_out) * 4                          # one-hot gather temps
    assert resident < budget, (
        f"graph too large for the fused resident-VMEM kernel "
        f"({resident} B > {budget} B budget); needs the tiled variant")
    # TODO(synk): tiled (tm, tk) per-layer fallback for adjacencies > VMEM, with
    # the node-row axis split across v7x's two TensorCores ("parallel" rows).

    kernel = functools.partial(
        _sage_direct_kernel, num_layers=num_layers,
        decode_type=decode_type, compute_dtype=compute_dtype)

    in_specs = [
        pl.BlockSpec(memory_space=pl.ANY),                 # adjacency: manual DMA
        pl.BlockSpec(x_cd.shape, lambda i: (0, 0)),
        pl.BlockSpec((1, 1), lambda i: (0, 0)),
        pl.BlockSpec((p, 1), lambda i: (0, 0)),
        pl.BlockSpec((p, 1), lambda i: (0, 0)),
    ]
    operands = [a_cd, x_cd, gamma2d, ni, nj]
    for (wl, wr), b in zip(w_list, b_list):
        in_specs.append(pl.BlockSpec(wl.shape, lambda i: (0, 0)))
        in_specs.append(pl.BlockSpec(wr.shape, lambda i: (0, 0)))
        in_specs.append(pl.BlockSpec(b.shape, lambda i: (0, 0)))
        operands.extend([wl, wr, b])

    grid_spec = pltpu.PrefetchScalarGridSpec(
        num_scalar_prefetch=0,
        grid=(1,),
        in_specs=in_specs,
        out_specs=pl.BlockSpec((p, 1), lambda i: (0, 0)),
        scratch_shapes=[
            pltpu.VMEM((n, n), compute_dtype),             # single-buffered adjacency
            pltpu.SemaphoreType.DMA,
        ],
    )

    out = pl.pallas_call(
        kernel,
        grid_spec=grid_spec,
        out_shape=jax.ShapeDtypeStruct((p, 1), jnp.float32),
        compiler_params=pltpu.CompilerParams(
            dimension_semantics=("arbitrary",),
            vmem_limit_bytes=budget),
    )(*operands)
    return out.reshape(p)


# --------------------------- Parameter construction ------------------------- #

def init_sage_direct_params(key, in_channels, hidden_channels, out_channels,
                            num_layers, gamma=0.0):
    dims = [in_channels] + [hidden_channels] * (num_layers - 1) + [out_channels]
    layers = []
    for li in range(num_layers):
        c_in, c_out = dims[li], dims[li + 1]
        key, k1, k2 = jax.random.split(key, 3)
        # lin_l: Linear(c_in, c_out, bias=True); lin_r: Linear(c_in, c_out, bias=False)
        w_l = jax.random.normal(k1, (c_in, c_out), jnp.float32) * 0.1
        b_l = jnp.zeros((1, c_out), jnp.float32)
        w_r = jax.random.normal(k2, (c_in, c_out), jnp.float32) * 0.1
        layers.append((w_l, b_l, w_r))
    return {"layers": layers, "gamma": jnp.float32(gamma)}


# ------------------------------ Pure-JAX reference -------------------------- #

def sage_direct_reference(params, x, adj, node_i, node_j, decode_type=None,
                          compute_dtype=jnp.float32):
    # With compute_dtype=f32 this is exactly the original module's forward;
    # with bf16 it mirrors the kernel's cast points (f32 accumulation).
    cd = compute_dtype
    a = adj.astype(cd)
    deg = jnp.sum(adj, axis=1, keepdims=True)
    deg_inv = jnp.where(deg > 0, 1.0 / jnp.maximum(deg, 1.0), 0.0)
    xc = x.astype(cd)
    num_layers = len(params["layers"])
    h = None
    for li, (w_l, b_l, w_r) in enumerate(params["layers"]):
        agg = jnp.dot(a, xc, preferred_element_type=jnp.float32) * deg_inv
        h = (jnp.dot(agg.astype(cd), w_l.astype(cd), preferred_element_type=jnp.float32)
             + b_l
             + jnp.dot(xc, w_r.astype(cd), preferred_element_type=jnp.float32))
        if li < num_layers - 1:
            xc = jnp.maximum(h, 0.0).astype(cd)
    xi = h[node_i, :]
    xj = h[node_j, :]
    if decode_type == "dist":
        return params["gamma"] - jnp.sqrt(jnp.sum((xi - xj) ** 2, axis=-1))
    return jnp.sum(xi * xj, axis=-1)


# ------------------------------------ Main ----------------------------------- #

if __name__ == "__main__":
    N = 64            # nodes
    IN_C = 32         # in_channels
    HID_C = 32        # hidden_channels
    OUT_C = 32        # out_channels
    NUM_LAYERS = 3
    P = 8             # number of (node_i, node_j) link queries

    key = jax.random.PRNGKey(0)
    key, kx, ka, ki, kj, kp = jax.random.split(key, 6)

    x = jax.random.normal(kx, (N, IN_C), jnp.float32)

    # dense symmetric 0/1 adjacency, no self loops
    a = (jax.random.uniform(ka, (N, N)) < 0.1).astype(jnp.float32)
    adj = jnp.clip(a + a.T, 0.0, 1.0)
    adj = adj * (1.0 - jnp.eye(N, dtype=jnp.float32))

    node_i = jax.random.randint(ki, (P,), 0, N)
    node_j = jax.random.randint(kj, (P,), 0, N)

    params = init_sage_direct_params(kp, IN_C, HID_C, OUT_C, NUM_LAYERS,
                                     gamma=0.5)

    # --- f32 MXU operands: exact original-module semantics ---
    for dt in (None, "dist"):
        out = sage_direct_forward(params, x, adj, node_i, node_j,
                                  decode_type=dt, compute_dtype=jnp.float32)
        out = jax.block_until_ready(out)
        ref = sage_direct_reference(params, x, adj, node_i, node_j,
                                    decode_type=dt, compute_dtype=jnp.float32)
        assert out.shape == (P,)
        assert jnp.allclose(out, ref, atol=1e-3, rtol=1e-3), (dt, out, ref)

    # --- default bf16 MXU operands: adjacency exact in bf16, f32 accumulation,
    #     bias/ReLU/normalisation/decode in f32. Compared against a reference
    #     that mirrors the same cast points (tolerance, not exactness).
    for dt in (None, "dist"):
        out = sage_direct_forward(params, x, adj, node_i, node_j,
                                  decode_type=dt)   # compute_dtype=bf16 default
        out = jax.block_until_ready(out)
        ref = sage_direct_reference(params, x, adj, node_i, node_j,
                                    decode_type=dt, compute_dtype=jnp.bfloat16)
        assert out.shape == (P,)
        assert jnp.allclose(out, ref, atol=1e-2, rtol=1e-2), (dt, out, ref)

    print("KERNEL_OK")
</pallas_src>

<mosaic_0001>
module attributes {stable_mosaic.version = 11 : i64} {
  func.func @_sage_direct_kernel(%arg0: i32, %arg1: memref<64x64xf32, #tpu.memory_space<any>>, %arg2: memref<64x32xf32, #tpu.memory_space<vmem>>, %arg3: memref<1x1xf32, #tpu.memory_space<vmem>>, %arg4: memref<8x1xi32, #tpu.memory_space<vmem>>, %arg5: memref<8x1xi32, #tpu.memory_space<vmem>>, %arg6: memref<32x32xf32, #tpu.memory_space<vmem>>, %arg7: memref<32x32xf32, #tpu.memory_space<vmem>>, %arg8: memref<1x32xf32, #tpu.memory_space<vmem>>, %arg9: memref<32x32xf32, #tpu.memory_space<vmem>>, %arg10: memref<32x32xf32, #tpu.memory_space<vmem>>, %arg11: memref<1x32xf32, #tpu.memory_space<vmem>>, %arg12: memref<32x32xf32, #tpu.memory_space<vmem>>, %arg13: memref<32x32xf32, #tpu.memory_space<vmem>>, %arg14: memref<1x32xf32, #tpu.memory_space<vmem>>, %arg15: memref<8x1xf32, #tpu.memory_space<vmem>>, %arg16: memref<64x64xf32, #tpu.memory_space<vmem>>, %arg17: memref<!tpu.dma_semaphore, #tpu.memory_space<semaphore_mem>>) attributes {dimension_semantics = [#tpu.dimension_semantics<arbitrary>], iteration_bounds = array<i64: 1>, scalar_prefetch = 0 : i64, scratch_operands = 2 : i64, tpu.core_type = #tpu.core_type<tc>, window_params = [{}, {pipeline_mode = #tpu.pipeline_mode<synchronous>, transform_indices = @transform_1, window_bounds = array<i64: 64, 32>}, {pipeline_mode = #tpu.pipeline_mode<synchronous>, transform_indices = @transform_2, window_bounds = array<i64: 1, 1>}, {pipeline_mode = #tpu.pipeline_mode<synchronous>, transform_indices = @transform_3, window_bounds = array<i64: 8, 1>}, {pipeline_mode = #tpu.pipeline_mode<synchronous>, transform_indices = @transform_4, window_bounds = array<i64: 8, 1>}, {pipeline_mode = #tpu.pipeline_mode<synchronous>, transform_indices = @transform_5, window_bounds = array<i64: 32, 32>}, {pipeline_mode = #tpu.pipeline_mode<synchronous>, transform_indices = @transform_6, window_bounds = array<i64: 32, 32>}, {pipeline_mode = #tpu.pipeline_mode<synchronous>, transform_indices = @transform_7, window_bounds = array<i64: 1, 32>}, {pipeline_mode = #tpu.pipeline_mode<synchronous>, transform_indices = @transform_8, window_bounds = array<i64: 32, 32>}, {pipeline_mode = #tpu.pipeline_mode<synchronous>, transform_indices = @transform_9, window_bounds = array<i64: 32, 32>}, {pipeline_mode = #tpu.pipeline_mode<synchronous>, transform_indices = @transform_10, window_bounds = array<i64: 1, 32>}, {pipeline_mode = #tpu.pipeline_mode<synchronous>, transform_indices = @transform_11, window_bounds = array<i64: 32, 32>}, {pipeline_mode = #tpu.pipeline_mode<synchronous>, transform_indices = @transform_12, window_bounds = array<i64: 32, 32>}, {pipeline_mode = #tpu.pipeline_mode<synchronous>, transform_indices = @transform_13, window_bounds = array<i64: 1, 32>}, {pipeline_mode = #tpu.pipeline_mode<synchronous>, transform_indices = @transform_14, window_bounds = array<i64: 8, 1>}]} {
    tpu.enqueue_dma source(%arg1 : memref<64x64xf32, #tpu.memory_space<any>>) target(%arg16 : memref<64x64xf32, #tpu.memory_space<vmem>>) target_semaphore(%arg17 : memref<!tpu.dma_semaphore, #tpu.memory_space<semaphore_mem>>)
    %c0 = arith.constant 0 : index
    %c0_0 = arith.constant 0 : index
    %0 = vector.load %arg2[%c0, %c0_0] : memref<64x32xf32, #tpu.memory_space<vmem>>, vector<64x32xf32>
    %c0_1 = arith.constant 0 : index
    %c0_2 = arith.constant 0 : index
    %1 = vector.load %arg7[%c0_1, %c0_2] : memref<32x32xf32, #tpu.memory_space<vmem>>, vector<32x32xf32>
    %cst = arith.constant dense<0.000000e+00> : vector<64x32xf32>
    %2 = tpu.matmul %0, %1, %cst {dimension_numbers = #tpu.dot_dimension_numbers<[1], [0], [0], [1], [0, 0, 1, 1], [], []>} : vector<64x32xf32>, vector<32x32xf32>, vector<64x32xf32> -> vector<64x32xf32>
    tpu.wait_dma2 semaphore(%arg17 : memref<!tpu.dma_semaphore, #tpu.memory_space<semaphore_mem>>) src(%arg1 : memref<64x64xf32, #tpu.memory_space<any>>) dst(%arg16 : memref<64x64xf32, #tpu.memory_space<vmem>>)
    %c0_3 = arith.constant 0 : index
    %c0_4 = arith.constant 0 : index
    %3 = vector.load %arg16[%c0_3, %c0_4] : memref<64x64xf32, #tpu.memory_space<vmem>>, vector<64x64xf32>
    %cst_5 = arith.constant dense<0.000000e+00> : vector<64xf32>
    %4 = vector.multi_reduction <add>, %3, %cst_5 [1] : vector<64x64xf32> to vector<64xf32>
    %5 = vector.shape_cast %4 : vector<64xf32> to vector<64x1xf32>
    %cst_6 = arith.constant 0.000000e+00 : f32
    %6 = vector.broadcast %cst_6 : f32 to vector<64x1xf32>
    %7 = arith.cmpf ogt, %5, %6 : vector<64x1xf32>
    %cst_7 = arith.constant 1.000000e+00 : f32
    %8 = vector.broadcast %cst_7 : f32 to vector<64x1xf32>
    %9 = arith.maximumf %5, %8 : vector<64x1xf32>
    %cst_8 = arith.constant 1.000000e+00 : f32
    %10 = vector.broadcast %cst_8 : f32 to vector<64x1xf32>
    %11 = arith.divf %10, %9 : vector<64x1xf32>
    %cst_9 = arith.constant 0.000000e+00 : f32
    %12 = vector.broadcast %cst_9 : f32 to vector<64x1xf32>
    %13 = arith.select %7, %11, %12 : vector<64x1xi1>, vector<64x1xf32>
    %cst_10 = arith.constant dense<0.000000e+00> : vector<64x32xf32>
    %14 = tpu.matmul %3, %0, %cst_10 {dimension_numbers = #tpu.dot_dimension_numbers<[1], [0], [0], [1], [0, 0, 1, 1], [], []>} : vector<64x64xf32>, vector<64x32xf32>, vector<64x32xf32> -> vector<64x32xf32>
    %15 = vector.broadcast %13 : vector<64x1xf32> to vector<64x32xf32>
    %16 = arith.mulf %14, %15 : vector<64x32xf32>
    %c0_11 = arith.constant 0 : index
    %c0_12 = arith.constant 0 : index
    %17 = vector.load %arg6[%c0_11, %c0_12] : memref<32x32xf32, #tpu.memory_space<vmem>>, vector<32x32xf32>
    %cst_13 = arith.constant dense<0.000000e+00> : vector<64x32xf32>
    %18 = tpu.matmul %16, %17, %cst_13 {dimension_numbers = #tpu.dot_dimension_numbers<[1], [0], [0], [1], [0, 0, 1, 1], [], []>} : vector<64x32xf32>, vector<32x32xf32>, vector<64x32xf32> -> vector<64x32xf32>
    %19 = arith.addf %18, %2 : vector<64x32xf32>
    %c0_14 = arith.constant 0 : index
    %c0_15 = arith.constant 0 : index
    %20 = vector.load %arg8[%c0_14, %c0_15] : memref<1x32xf32, #tpu.memory_space<vmem>>, vector<1x32xf32>
    %21 = vector.broadcast %20 : vector<1x32xf32> to vector<64x32xf32>
    %22 = arith.addf %19, %21 : vector<64x32xf32>
    %cst_16 = arith.constant 0.000000e+00 : f32
    %23 = vector.broadcast %cst_16 : f32 to vector<64x32xf32>
    %24 = arith.maximumf %22, %23 : vector<64x32xf32>
    %c0_17 = arith.constant 0 : index
    %c0_18 = arith.constant 0 : index
    %25 = vector.load %arg10[%c0_17, %c0_18] : memref<32x32xf32, #tpu.memory_space<vmem>>, vector<32x32xf32>
    %cst_19 = arith.constant dense<0.000000e+00> : vector<64x32xf32>
    %26 = tpu.matmul %24, %25, %cst_19 {dimension_numbers = #tpu.dot_dimension_numbers<[1], [0], [0], [1], [0, 0, 1, 1], [], []>} : vector<64x32xf32>, vector<32x32xf32>, vector<64x32xf32> -> vector<64x32xf32>
    %cst_20 = arith.constant dense<0.000000e+00> : vector<64x32xf32>
    %27 = tpu.matmul %3, %24, %cst_20 {dimension_numbers = #tpu.dot_dimension_numbers<[1], [0], [0], [1], [0, 0, 1, 1], [], []>} : vector<64x64xf32>, vector<64x32xf32>, vector<64x32xf32> -> vector<64x32xf32>
    %28 = vector.broadcast %13 : vector<64x1xf32> to vector<64x32xf32>
    %29 = arith.mulf %27, %28 : vector<64x32xf32>
    %c0_21 = arith.constant 0 : index
    %c0_22 = arith.constant 0 : index
    %30 = vector.load %arg9[%c0_21, %c0_22] : memref<32x32xf32, #tpu.memory_space<vmem>>, vector<32x32xf32>
    %cst_23 = arith.constant dense<0.000000e+00> : vector<64x32xf32>
    %31 = tpu.matmul %29, %30, %cst_23 {dimension_numbers = #tpu.dot_dimension_numbers<[1], [0], [0], [1], [0, 0, 1, 1], [], []>} : vector<64x32xf32>, vector<32x32xf32>, vector<64x32xf32> -> vector<64x32xf32>
    %32 = arith.addf %31, %26 : vector<64x32xf32>
    %c0_24 = arith.constant 0 : index
    %c0_25 = arith.constant 0 : index
    %33 = vector.load %arg11[%c0_24, %c0_25] : memref<1x32xf32, #tpu.memory_space<vmem>>, vector<1x32xf32>
    %34 = vector.broadcast %33 : vector<1x32xf32> to vector<64x32xf32>
    %35 = arith.addf %32, %34 : vector<64x32xf32>
    %cst_26 = arith.constant 0.000000e+00 : f32
    %36 = vector.broadcast %cst_26 : f32 to vector<64x32xf32>
    %37 = arith.maximumf %35, %36 : vector<64x32xf32>
    %c0_27 = arith.constant 0 : index
    %c0_28 = arith.constant 0 : index
    %38 = vector.load %arg13[%c0_27, %c0_28] : memref<32x32xf32, #tpu.memory_space<vmem>>, vector<32x32xf32>
    %cst_29 = arith.constant dense<0.000000e+00> : vector<64x32xf32>
    %39 = tpu.matmul %37, %38, %cst_29 {dimension_numbers = #tpu.dot_dimension_numbers<[1], [0], [0], [1], [0, 0, 1, 1], [], []>} : vector<64x32xf32>, vector<32x32xf32>, vector<64x32xf32> -> vector<64x32xf32>
    %cst_30 = arith.constant dense<0.000000e+00> : vector<64x32xf32>
    %40 = tpu.matmul %3, %37, %cst_30 {dimension_numbers = #tpu.dot_dimension_numbers<[1], [0], [0], [1], [0, 0, 1, 1], [], []>} : vector<64x64xf32>, vector<64x32xf32>, vector<64x32xf32> -> vector<64x32xf32>
    %41 = vector.broadcast %13 : vector<64x1xf32> to vector<64x32xf32>
    %42 = arith.mulf %40, %41 : vector<64x32xf32>
    %c0_31 = arith.constant 0 : index
    %c0_32 = arith.constant 0 : index
    %43 = vector.load %arg12[%c0_31, %c0_32] : memref<32x32xf32, #tpu.memory_space<vmem>>, vector<32x32xf32>
    %cst_33 = arith.constant dense<0.000000e+00> : vector<64x32xf32>
    %44 = tpu.matmul %42, %43, %cst_33 {dimension_numbers = #tpu.dot_dimension_numbers<[1], [0], [0], [1], [0, 0, 1, 1], [], []>} : vector<64x32xf32>, vector<32x32xf32>, vector<64x32xf32> -> vector<64x32xf32>
    %45 = arith.addf %44, %39 : vector<64x32xf32>
    %c0_34 = arith.constant 0 : index
    %c0_35 = arith.constant 0 : index
    %46 = vector.load %arg14[%c0_34, %c0_35] : memref<1x32xf32, #tpu.memory_space<vmem>>, vector<1x32xf32>
    %47 = vector.broadcast %46 : vector<1x32xf32> to vector<64x32xf32>
    %48 = arith.addf %45, %47 : vector<64x32xf32>
    %49 = tpu.iota {dimensions = array<i32: 1>} : vector<8x64xi32>
    %c0_36 = arith.constant 0 : index
    %c0_37 = arith.constant 0 : index
    %50 = vector.load %arg4[%c0_36, %c0_37] : memref<8x1xi32, #tpu.memory_space<vmem>>, vector<8x1xi32>
    %51 = vector.broadcast %50 : vector<8x1xi32> to vector<8x64xi32>
    %52 = arith.cmpi eq, %49, %51 : vector<8x64xi32>
    %cst_38 = arith.constant 1.000000e+00 : f32
    %cst_39 = arith.constant 0.000000e+00 : f32
    %53 = vector.broadcast %cst_38 : f32 to vector<8x64xf32>
    %54 = vector.broadcast %cst_39 : f32 to vector<8x64xf32>
    %55 = arith.select %52, %53, %54 : vector<8x64xi1>, vector<8x64xf32>
    %c0_40 = arith.constant 0 : index
    %c0_41 = arith.constant 0 : index
    %56 = vector.load %arg5[%c0_40, %c0_41] : memref<8x1xi32, #tpu.memory_space<vmem>>, vector<8x1xi32>
    %57 = vector.broadcast %56 : vector<8x1xi32> to vector<8x64xi32>
    %58 = arith.cmpi eq, %49, %57 : vector<8x64xi32>
    %cst_42 = arith.constant 1.000000e+00 : f32
    %cst_43 = arith.constant 0.000000e+00 : f32
    %59 = vector.broadcast %cst_42 : f32 to vector<8x64xf32>
    %60 = vector.broadcast %cst_43 : f32 to vector<8x64xf32>
    %61 = arith.select %58, %59, %60 : vector<8x64xi1>, vector<8x64xf32>
    %cst_44 = arith.constant dense<0.000000e+00> : vector<8x32xf32>
    %62 = tpu.matmul %55, %48, %cst_44 {dimension_numbers = #tpu.dot_dimension_numbers<[1], [0], [0], [1], [0, 0, 1, 1], [], []>} : vector<8x64xf32>, vector<64x32xf32>, vector<8x32xf32> -> vector<8x32xf32>
    %cst_45 = arith.constant dense<0.000000e+00> : vector<8x32xf32>
    %63 = tpu.matmul %61, %48, %cst_45 {dimension_numbers = #tpu.dot_dimension_numbers<[1], [0], [0], [1], [0, 0, 1, 1], [], []>} : vector<8x64xf32>, vector<64x32xf32>, vector<8x32xf32> -> vector<8x32xf32>
    %64 = arith.mulf %62, %63 : vector<8x32xf32>
    %cst_46 = arith.constant dense<0.000000e+00> : vector<8xf32>
    %65 = vector.multi_reduction <add>, %64, %cst_46 [1] : vector<8x32xf32> to vector<8xf32>
    %66 = vector.shape_cast %65 : vector<8xf32> to vector<8x1xf32>
    %c0_47 = arith.constant 0 : index
    %c0_48 = arith.constant 0 : index
    %67 = vector.load %arg15[%c0_47, %c0_48] : memref<8x1xf32, #tpu.memory_space<vmem>>, vector<8x1xf32>
    tpu.vector_store %arg15[%c0_47, %c0_48], %66 {strides = array<i32>} : memref<8x1xf32, #tpu.memory_space<vmem>>, vector<8x1xf32>,
    return
  }
  func.func @transform_1(%arg0: i32) -> (i32, i32) {
    %c0_i32 = arith.constant 0 : i32
    %c0_i32_0 = arith.constant 0 : i32
    %c0_i32_1 = arith.constant 0 : i32
    return %c0_i32, %c0_i32_0 : i32, i32
  }
  func.func @transform_2(%arg0: i32) -> (i32, i32) {
    %c0_i32 = arith.constant 0 : i32
    %c0_i32_0 = arith.constant 0 : i32
    %c0_i32_1 = arith.constant 0 : i32
    return %c0_i32, %c0_i32_0 : i32, i32
  }
  func.func @transform_3(%arg0: i32) -> (i32, i32) {
    %c0_i32 = arith.constant 0 : i32
    %c0_i32_0 = arith.constant 0 : i32
    %c0_i32_1 = arith.constant 0 : i32
    return %c0_i32, %c0_i32_0 : i32, i32
  }
  func.func @transform_4(%arg0: i32) -> (i32, i32) {
    %c0_i32 = arith.constant 0 : i32
    %c0_i32_0 = arith.constant 0 : i32
    %c0_i32_1 = arith.constant 0 : i32
    return %c0_i32, %c0_i32_0 : i32, i32
  }
  func.func @transform_5(%arg0: i32) -> (i32, i32) {
    %c0_i32 = arith.constant 0 : i32
    %c0_i32_0 = arith.constant 0 : i32
    %c0_i32_1 = arith.constant 0 : i32
    return %c0_i32, %c0_i32_0 : i32, i32
  }
  func.func @transform_6(%arg0: i32) -> (i32, i32) {
    %c0_i32 = arith.constant 0 : i32
    %c0_i32_0 = arith.constant 0 : i32
    %c0_i32_1 = arith.constant 0 : i32
    return %c0_i32, %c0_i32_0 : i32, i32
  }
  func.func @transform_7(%arg0: i32) -> (i32, i32) {
    %c0_i32 = arith.constant 0 : i32
    %c0_i32_0 = arith.constant 0 : i32
    %c0_i32_1 = arith.constant 0 : i32
    return %c0_i32, %c0_i32_0 : i32, i32
  }
  func.func @transform_8(%arg0: i32) -> (i32, i32) {
    %c0_i32 = arith.constant 0 : i32
    %c0_i32_0 = arith.constant 0 : i32
    %c0_i32_1 = arith.constant 0 : i32
    return %c0_i32, %c0_i32_0 : i32, i32
  }
  func.func @transform_9(%arg0: i32) -> (i32, i32) {
    %c0_i32 = arith.constant 0 : i32
    %c0_i32_0 = arith.constant 0 : i32
    %c0_i32_1 = arith.constant 0 : i32
    return %c0_i32, %c0_i32_0 : i32, i32
  }
  func.func @transform_10(%arg0: i32) -> (i32, i32) {
    %c0_i32 = arith.constant 0 : i32
    %c0_i32_0 = arith.constant 0 : i32
    %c0_i32_1 = arith.constant 0 : i32
    return %c0_i32, %c0_i32_0 : i32, i32
  }
  func.func @transform_11(%arg0: i32) -> (i32, i32) {
    %c0_i32 = arith.constant 0 : i32
    %c0_i32_0 = arith.constant 0 : i32
    %c0_i32_1 = arith.constant 0 : i32
    return %c0_i32, %c0_i32_0 : i32, i32
  }
  func.func @transform_12(%arg0: i32) -> (i32, i32) {
    %c0_i32 = arith.constant 0 : i32
    %c0_i32_0 = arith.constant 0 : i32
    %c0_i32_1 = arith.constant 0 : i32
    return %c0_i32, %c0_i32_0 : i32, i32
  }
  func.func @transform_13(%arg0: i32) -> (i32, i32) {
    %c0_i32 = arith.constant 0 : i32
    %c0_i32_0 = arith.constant 0 : i32
    %c0_i32_1 = arith.constant 0 : i32
    return %c0_i32, %c0_i32_0 : i32, i32
  }
  func.func @transform_14(%arg0: i32) -> (i32, i32) {
    %c0_i32 = arith.constant 0 : i32
    %c0_i32_0 = arith.constant 0 : i32
    %c0_i32_1 = arith.constant 0 : i32
    return %c0_i32, %c0_i32_0 : i32, i32
  }
}

</mosaic_0001>

<bundles_post_ra>
// kernel: tpu_custom_call.1
= control target key start
LH: loop header
LB: loop body
LE: loop exit
PB: predicated region body
PF: predicated region fallthrough
CT: control target
= control target key end

     0   :  { %21 = vsyncpa [#allocation6], 0  ;;  %s1775_s0 = inlined_call_operand.vmem [shape: f32[64,64], index: 0, kind: input, shape index: {}]   ;;  %s1776_s1 = inlined_call_operand.vmem [shape: f32[64,32], index: 1, kind: input, shape index: {}]   ;;  %s1777_s2 = inlined_call_operand.<no memory space> [shape: f32[1,1], index: 2, kind: input, shape index: {}]   ;;  %s1778_s3 = inlined_call_operand.vmem [shape: s32[8,1], index: 3, kind: input, shape index: {}]   ;;  %s1779_s4 = inlined_call_operand.vmem [shape: s32[8,1], index: 4, kind: input, shape index: {}]   ;;  %s1780_s5 = inlined_call_operand.vmem [shape: f32[32,32], index: 5, kind: input, shape index: {}]   ;;  %s1781_s6 = inlined_call_operand.hbm [shape: f32[32,32], index: 6, kind: input, shape index: {}]   ;;  %s1782_s7 = inlined_call_operand.vmem [shape: f32[1,32], index: 7, kind: input, shape index: {}]   ;;  %s1783_s8 = inlined_call_operand.hbm [shape: f32[32,32], index: 8, kind: input, shape index: {}]   ;;  %s1784_s9 = inlined_call_operand.hbm [shape: f32[32,32], index: 9, kind: input, shape index: {}]   ;;  %s1785_s10 = inlined_call_operand.vmem [shape: f32[1,32], index: 10, kind: input, shape index: {}]   ;;  %s1786_s11 = inlined_call_operand.hbm [shape: f32[32,32], index: 11, kind: input, shape index: {}]   ;;  %s1787_s12 = inlined_call_operand.hbm [shape: f32[32,32], index: 12, kind: input, shape index: {}]   ;;  %s1788_s13 = inlined_call_operand.vmem [shape: f32[1,32], index: 13, kind: input, shape index: {}]   ;;  %s1789_s14 = inlined_call_operand.vmem [shape: f32[8,1], index: 14, kind: output, shape index: {}]  }
   0x1   :  { %22 = vsyncpa [#allocation8], 0 }
   0x2   :  { %23 = vsyncpa [#allocation11], 0  ;;  %s53_s30 = sshll.u32 %s1783_s8, 4  ;;  %s1311_s15 = smov [#allocation7]   ;;  %s54_s30 = int_to_ptr.hbm [resolvable:$true] %s53_s30 }
   0x3   :  { %s55_s16 = sshll.u32 %s1311_s15, 4  ;;  %s81_s18 = sshll.u32 %s1786_s11, 4  ;;  %s56_s16 = int_to_ptr.vmem [resolvable:$true] %s55_s16  ;;  %s82_s18 = int_to_ptr.hbm [resolvable:$true] %s81_s18 }
   0x4   :  { %s1312_s19 = smov 128   ;;  %s1313_s20 = smov 8  }
   0x5   :  { %61 = dma.hbm_to_vmem [thread:$0]  %s54_s30, 512, %s56_s16, [#allocation8], %s1312_s19, %s1312_s19, %s1313_s20  }
   0x6   :  { %s1314_s21 = smov [#allocation10]   ;;  %s38_s25 = sshll.u32 %s1781_s6, 4  ;;  %s39_s25 = int_to_ptr.hbm [resolvable:$true] %s38_s25 }
   0x7   :  { %s83_s22 = sshll.u32 %s1314_s21, 4  ;;  %s66_s27 = sshll.u32 %s1784_s9, 4  ;;  %s84_s22 = int_to_ptr.vmem [resolvable:$true] %s83_s22  ;;  %s67_s27 = int_to_ptr.hbm [resolvable:$true] %s66_s27 }
   0x8   :  { %89 = dma.hbm_to_vmem [thread:$0]  %s82_s18, 512, %s84_s22, [#allocation11], %s1312_s19, %s1312_s19, %s1313_s20  }
   0x9   :  { %s1315_s28 = smov [#allocation5]   ;;  %s1316_s11 = smov [#allocation9]  }
   0xa   :  { %s40_s29 = sshll.u32 %s1315_s28, 4  ;;  %s68_s30 = sshll.u32 %s1316_s11, 4  ;;  %s41_s29 = int_to_ptr.vmem [resolvable:$true] %s40_s29  ;;  %s69_s30 = int_to_ptr.vmem [resolvable:$true] %s68_s30 }
   0xb   :  { %46 = dma.hbm_to_vmem [thread:$0]  %s39_s25, 512, %s41_s29, [#allocation6], %s1312_s19, %s1312_s19, %s1313_s20  }
   0xc   :  { %s94_s17 = sshll.u32 %s1787_s12, 4  ;;  %s1317_s6 = smov [#allocation12]   ;;  %s95_s17 = int_to_ptr.hbm [resolvable:$true] %s94_s17 }
   0xd   :  { %74 = dma.hbm_to_vmem [thread:$0]  %s67_s27, 512, %s69_s30, [#allocation8], %s1312_s19, %s1312_s19, %s1313_s20  }
   0xe   :  { %s96_s2 = sshll.u32 %s1317_s6, 4  ;;  %s97_s2 = int_to_ptr.vmem [resolvable:$true] %s96_s2 }
   0xf   :  { %102 = dma.hbm_to_vmem [thread:$0]  %s95_s17, 512, %s97_s2, [#allocation11], %s1312_s19, %s1312_s19, %s1313_s20  }
  0x10   :  { %1303 = dma.done.wait [#allocation6], 512  }
  0x11   :  { %1304 = vsyncadd [#allocation6], 4294966784 }
  0x12   :  { %1305 = dma.done.wait [#allocation8], 1024  }
  0x13   :  { %1306 = vsyncadd [#allocation8], 4294966272 }
  0x14   :  { %1307 = dma.done.wait [#allocation11], 1024  }
  0x15   :  { %1308 = vsyncadd [#allocation11], 4294966272  ;;  %v1413_v0 = vld [vmem:[%s1775_s0] sm:$0xff]  ;;  %v1418_v1 = vld [vmem:[%s1775_s0 + $0x8] sm:$0xff] }
  0x16   :  { %v1423_v2 = vld [vmem:[%s1775_s0 + $0x10] sm:$0xff]  ;;  %v1428_v3 = vld [vmem:[%s1775_s0 + $0x18] sm:$0xff]  ;;  %v1433_v4 = vld [vmem:[%s1775_s0 + $0x20] sm:$0xff] }
  0x17   :  { %v1438_v5 = vld [vmem:[%s1775_s0 + $0x28] sm:$0xff]  ;;  %v1443_v6 = vld [vmem:[%s1775_s0 + $0x30] sm:$0xff]  ;;  %v1448_v7 = vld [vmem:[%s1775_s0 + $0x38] sm:$0xff] }
  0x18   :  { %v168_v8 = vld [vmem:[#allocation5 + $0x18] sm:$0xff]  ;;  %v167_v9 = vld [vmem:[#allocation5 + $0x10] sm:$0xff] }
  0x19   :  { %1141 = vmatpush.msra.mxu1 %v168_v8  ;;  %1142 = vmatpush.msra.mxu2 %v168_v8 }
  0x1a   :  { %156 = vsyncadd [#allocation3], 1024  ;;  %v166_v10 = vld [vmem:[#allocation5 + $0x8] sm:$0xff]  ;;  %206 = vmatpush.msra.mxu0 %v168_v8  ;;  %1143 = vmatpush.msra.mxu3 %v168_v8  ;;  %v165_v11 = vld [vmem:[#allocation5] sm:$0xff]  ;;  %vm169_vm0 = vcmask 261120   ;;  %vm246_vm1 = vcmask 523264  }
  0x1b   :  { %1144 = vmatpush.msra.mxu1 %v167_v9  ;;  %1145 = vmatpush.msra.mxu2 %v167_v9  ;;  %v159_v12 = vld [vmem:[%s1776_s1 + $0x10] sm:$0xff]  ;;  %v162_v13 = vld [vmem:[%s1776_s1 + $0x28] sm:$0xff]  ;;  %v157_v14 = vld [vmem:[%s1776_s1] sm:$0xff] }
  0x1c   :  { %207 = vmatpush.msra.mxu0 %v167_v9  ;;  %1146 = vmatpush.msra.mxu3 %v167_v9  ;;  %v164_v15 = vld [vmem:[%s1776_s1 + $0x38] sm:$0xff]  ;;  %v163_v17 = vld [vmem:[%s1776_s1 + $0x30] sm:$0xff]  ;;  %v158_v18 = vld [vmem:[%s1776_s1 + $0x8] sm:$0xff] }
  0x1d   :  { %1147 = vmatpush.msra.mxu1 %v166_v10  ;;  %1148 = vmatpush.msra.mxu2 %v166_v10  ;;  %v160_v16 = vld [vmem:[%s1776_s1 + $0x18] sm:$0xff]  ;;  %v161_v19 = vld [vmem:[%s1776_s1 + $0x20] sm:$0xff] }
  0x1e   :  { %208 = vmatpush.msra.mxu0 %v166_v10  ;;  %1149 = vmatpush.msra.mxu3 %v166_v10 }
  0x1f   :  { %1150 = vmatpush.msra.mxu1 %v165_v11  ;;  %1151 = vmatpush.msra.mxu2 %v165_v11 }
  0x20   :  { %1068 = vmatmul.msk.f32.vlgmr.msra.gmra.mxu1 %vm169_vm0, %v159_v12  ;;  %1071 = vmatmul.msk.f32.vlgmr.msra.gmra.mxu2 %vm169_vm0, %v162_v13 }
  0x21   :  { %209 = vmatpush.msra.mxu0 %v165_v11  ;;  %1152 = vmatpush.msra.mxu3 %v165_v11 }
  0x22   :  { %1066 = vmatmul.msk.f32.vlgmr.msra.gmra.mxu0 %vm169_vm0, %v157_v14  ;;  %1073 = vmatmul.msk.f32.vlgmr.msra.gmra.mxu3 %vm169_vm0, %v164_v15 }
  0x23   :  { %447 = vmatpush.msrb.mxu1 %v164_v15 }
  0x28   :  { %1069 = vmatmul.msk.f32.gmra.mxu1 %vm169_vm0, %v160_v16  ;;  %1072 = vmatmul.msk.f32.gmra.mxu2 %vm169_vm0, %v163_v17 }
  0x2a   :  { %1067 = vmatmul.msk.f32.gmra.mxu0 %vm169_vm0, %v158_v18 }
  0x30   :  { %1070 = vmatmul.msk.f32.gmra.mxu1 %vm169_vm0, %v161_v19 }
  0x9d   :  { %v1482_v20 = vpop.f32.mrf.mxu1 }
  0x9f   :  { %v1484_v21 = vpop.f32.mrf.mxu0 }
  0xa3   :  { %v1486_v22 = vpop.f32.mrf.mxu2 }
  0xa5   :  { %v1488_v23 = vpop.f32.mrf.mxu1  ;;  %v1490_v24 = vpop.f32.mrf.mxu3 }
  0xa7   :  { %v1492_v25 = vpop.f32.mrf.mxu0 }
  0xab   :  { %v1494_v26 = vpop.f32.mrf.mxu2 }
  0xad   :  { %v1496_v27 = vpop.f32.mrf.mxu1 }
  0xae   :  { %1309 = dma.done.wait [#allocation3], 1024 }
  0xaf   :  { %1310 = vsyncadd [#allocation3], 4294966272  ;;  %v247_v28 = vsel %vm246_vm1, %v1413_v0, 0.0  ;;  %v253_v29 = vsel %vm246_vm1, %v1423_v2, 0.0  ;;  %448 = vmatpush.msrb.mxu1 %v163_v17  ;;  %v259_v30 = vsel %vm246_vm1, %v1433_v4, 0.0  ;;  %v250_v31 = vsel %vm246_vm1, %v1418_v1, 0.0 }
  0xb0   :  { %248 = vadd.xlane.f32.xlu0 %v247_v28  ;;  %254 = vadd.xlane.f32.xlu1 %v253_v29  ;;  %v256_v32 = vsel %vm246_vm1, %v1428_v3, 0.0  ;;  %v262_v33 = vsel %vm246_vm1, %v1438_v5, 0.0  ;;  %v265_v34 = vsel %vm246_vm1, %v1443_v6, 0.0  ;;  %v268_v35 = vsel %vm246_vm1, %v1448_v7, 0.0  ;;  %v491_v36 = vld [vmem:[%s1780_s5 + $0x18] sm:$0xff]  ;;  %v490_v37 = vld [vmem:[%s1780_s5 + $0x10] sm:$0xff] }
  0xb1   :  { %260 = vadd.xlane.f32.xlu2 %v259_v30  ;;  %449 = vmatpush.msrb.mxu1 %v162_v13  ;;  %v489_v38 = vld [vmem:[%s1780_s5 + $0x8] sm:$0xff]  ;;  %v488_v39 = vld [vmem:[%s1780_s5] sm:$0xff] }
  0xb2   :  { %528 = vmatpush.msrb.mxu2 %v491_v36 }
  0xb3   :  { %450 = vmatpush.msrb.mxu1 %v161_v19 }
  0xb4   :  { %529 = vmatpush.msrb.mxu2 %v490_v37 }
  0xb5   :  { %451 = vmatpush.msrb.mxu1 %v160_v16 }
  0xb6   :  { %530 = vmatpush.msrb.mxu2 %v489_v38 }
  0xb7   :  { %452 = vmatpush.msrb.mxu1 %v159_v12 }
  0xb8   :  { %251 = vadd.xlane.f32.xlu0 %v250_v31  ;;  %257 = vadd.xlane.f32.xlu1 %v256_v32 }
  0xb9   :  { %263 = vadd.xlane.f32.xlu2 %v262_v33  ;;  %453 = vmatpush.msrb.mxu1 %v158_v18 }
  0xba   :  { %531 = vmatpush.msrb.mxu2 %v488_v39 }
  0xbb   :  { %454 = vmatpush.msrb.mxu1 %v157_v14 }
  0xbc   :  { %1074 = vmatmul.msk.f32.vlgmr.msrb.gmra.mxu1 %vm246_vm1, %v1413_v0 }
  0xc0   :  { %266 = vadd.xlane.f32.xlu0 %v265_v34  ;;  %269 = vadd.xlane.f32.xlu1 %v268_v35 }
  0xc4   :  { %1075 = vmatmul.msk.f32.gmra.mxu1 %vm246_vm1, %v1418_v1 }
  0xcc   :  { %1076 = vmatmul.msk.f32.gmra.mxu1 %vm246_vm1, %v1423_v2 }
  0xd4   :  { %1077 = vmatmul.msk.f32.gmra.mxu1 %vm246_vm1, %v1428_v3 }
  0xdc   :  { %1078 = vmatmul.msk.f32.gmra.mxu1 %vm246_vm1, %v1433_v4 }
  0xe4   :  { %1079 = vmatmul.msk.f32.gmra.mxu1 %vm246_vm1, %v1438_v5 }
  0xec   :  { %1080 = vmatmul.msk.f32.gmra.mxu1 %vm246_vm1, %v1443_v6 }
  0xf4   :  { %1081 = vmatmul.msk.f32.gmra.mxu1 %vm246_vm1, %v1448_v7 }
 0x123   :  { %v249_v40 = vpop.xlane.xlu0 %248  ;;  %v1542_v42 = vpop.xlane.xlu1 %254 }
 0x124   :  { %v279_v41 = vmax.f32 %v249_v40, 1.0  ;;  %v1545_v43 = vmax.f32 %v1542_v42, 1.0  ;;  %v1555_v54 = vpop.xlane.xlu2 %260  ;;  %vm271_vm6 = vcmp.gt.f32.partialorder %v249_v40, 0.0 }
 0x125   :  { %v1561_v62 = vmax.f32 %v1555_v54, 1.0 }
 0x126   :  { %1167 = vrcp.f32 %v279_v41  ;;  %v298_v53 = vand.u32 2147483648, %v279_v41  ;;  %v296_v55 = vand.u32 2147483647, %v279_v41  ;;  %vm292_vm3 = vweird.f32 %v279_v41 }
 0x127   :  { %1169 = vrcp.f32 %v1545_v43  ;;  %vm322_vm11 = vweird.f32 %v1545_v43  ;;  %v328_v33 = vand.u32 2147483648, %v1545_v43  ;;  %v326_v35 = vand.u32 2147483647, %v1545_v43 }
 0x128   :  { %v299_v61 = vor.u32 1.1754944e-38, %v298_v53  ;;  %vm297_vm5 = vcmp.eq.f32.partialorder %v296_v55, 8.507059e+37 }
 0x129   :  { %vm327_vm15 = vcmp.eq.f32.partialorder %v326_v35, 8.507059e+37 }
 0x12b   :  { %v252_v44 = vpop.xlane.xlu0 %251  ;;  %v1548_v47 = vpop.xlane.xlu1 %257 }
 0x12c   :  { %v1168_v45 = vpop.eup %1167  ;;  %v280_v46 = vmax.f32 %v252_v44, 1.0  ;;  %v1551_v49 = vmax.f32 %v1548_v47, 1.0  ;;  %v1571_v19 = vpop.xlane.xlu2 %263  ;;  %vm272_vm13 = vcmp.gt.f32.partialorder %v252_v44, 0.0 }
 0x12d   :  { %v288_v48 = vmul.f32 %v1168_v45, %v279_v41  ;;  %v1553_v51 = vpop.eup %1169  ;;  %vm293_vm2 = vweird.f32 %v1168_v45  ;;  %v1578_v31 = vmax.f32 %v1571_v19, 1.0 }
 0x12e   :  { %1171 = vrcp.f32 %v280_v46  ;;  %v318_v58 = vmul.f32 %v1553_v51, %v1545_v43  ;;  %vm294_vm4 = vmor %vm292_vm3, %vm293_vm2  ;;  %v313_v12 = vand.u32 2147483648, %v280_v46  ;;  %v311_v15 = vand.u32 2147483647, %v280_v46 }
 0x12f   :  { %v289_v50 = vsub.f32 1.0, %v288_v48  ;;  %1173 = vrcp.f32 %v1551_v49  ;;  %vm307_vm8 = vweird.f32 %v280_v46  ;;  %vm323_vm12 = vweird.f32 %v1553_v51 }
 0x130   :  { %v319_v9 = vsub.f32 1.0, %v318_v58  ;;  %1175 = vrcp.f32 %v1561_v62  ;;  %v314_v30 = vor.u32 1.1754944e-38, %v313_v12  ;;  %vm312_vm10 = vcmp.eq.f32.partialorder %v311_v15, 8.507059e+37  ;;  %vm1583_vm14 = vmor %vm322_vm11, %vm323_vm12 }
 0x131   :  { %v290_v52 = vmul.f32 %v1168_v45, %v289_v50  ;;  %1177 = vrcp.f32 %v1578_v31  ;;  %vm337_vm2 = vweird.f32 %v1551_v49  ;;  %v343_v53 = vand.u32 2147483648, %v1551_v49 }
 0x132   :  { %v320_v28 = vmul.f32 %v1553_v51, %v319_v9  ;;  %vm367_vm12 = vweird.f32 %v1578_v31 }
 0x133   :  { %v291_v56 = vadd.f32 %v1168_v45, %v290_v52  ;;  %v1592_v48 = vpop.xlane.xlu0 %266 }
 0x134   :  { %v1172_v57 = vpop.eup %1171  ;;  %v321_v34 = vadd.f32 %v1553_v51, %v320_v28  ;;  %v1603_v50 = vmax.f32 %v1592_v48, 1.0 }
 0x135   :  { %v303_v59 = vmul.f32 %v1172_v57, %v280_v46  ;;  %v295_v60 = vsel %vm294_vm4, %v1168_v45, %v291_v56  ;;  %v1563_v10 = vpop.eup %1173  ;;  %vm308_vm7 = vweird.f32 %v1172_v57  ;;  %v329_v45 = vor.u32 1.1754944e-38, %v328_v33 }
 0x136   :  { %v300_v63 = vsel %vm297_vm5, %v299_v61, %v295_v60  ;;  %v333_v18 = vmul.f32 %v1563_v10, %v1551_v49  ;;  %vm309_vm9 = vmor %vm307_vm8, %vm308_vm7  ;;  %v1176_v37 = vpop.eup %1175  ;;  %v325_v43 = vsel %vm1583_vm14, %v1553_v51, %v321_v34  ;;  %vm338_vm3 = vweird.f32 %v1563_v10 }
 0x137   :  { %v304_v8 = vsub.f32 1.0, %v303_v59  ;;  %v1565_v13 = vsel %vm271_vm6, %v300_v63, 0.0  ;;  %v348_v46 = vmul.f32 %v1176_v37, %v1561_v62  ;;  %vm273_vm4 = vcmp.gt.f32.partialorder %v1542_v42, 0.0  ;;  %vm1608_vm5 = vmor %vm337_vm2, %vm338_vm3 }
 0x138   :  { %v334_v36 = vsub.f32 1.0, %v333_v18  ;;  %v330_v52 = vsel %vm327_vm15, %v329_v45, %v325_v43  ;;  %v341_v51 = vand.u32 2147483647, %v1551_v49  ;;  %1179 = vrcp.f32 %v1603_v50 }
 0x139   :  { %v305_v11 = vmul.f32 %v1172_v57, %v304_v8  ;;  %v456_v14 = vpop.f32.mrf.mxu1  ;;  %v349_v56 = vsub.f32 1.0, %v348_v46  ;;  %v1612_v59 = vsel %vm273_vm4, %v330_v52, 0.0  ;;  %v344_v61 = vor.u32 1.1754944e-38, %v343_v53  ;;  %v1617_v8 = vpop.xlane.xlu1 %269 }
 0x13a   :  { %v480_v16 = vmul.f32 %v456_v14, %v1565_v13  ;;  %v335_v44 = vmul.f32 %v1563_v10, %v334_v36  ;;  %vm342_vm6 = vcmp.eq.f32.partialorder %v341_v51, 8.507059e+37  ;;  %vm352_vm7 = vweird.f32 %v1561_v62 }
 0x13b   :  { %v306_v17 = vadd.f32 %v1172_v57, %v305_v11  ;;  %v350_v9 = vmul.f32 %v1176_v37, %v349_v56  ;;  %vm353_vm8 = vweird.f32 %v1176_v37  ;;  %v1626_v11 = vmax.f32 %v1617_v8, 1.0 }
 0x13c   :  { %1082 = vmatmul.msk.f32.vlgmr.msrb.gmra.mxu2 %vm169_vm0, %v480_v16  ;;  %v336_v55 = vadd.f32 %v1563_v10, %v335_v44  ;;  %v358_v14 = vand.u32 2147483648, %v1561_v62  ;;  %v356_v16 = vand.u32 2147483647, %v1561_v62  ;;  %vm275_vm14 = vcmp.gt.f32.partialorder %v1555_v54, 0.0 }
 0x13d   :  { %v310_v29 = vsel %vm309_vm9, %v1172_v57, %v306_v17  ;;  %v1178_v57 = vpop.eup %1177  ;;  %vm274_vm9 = vcmp.gt.f32.partialorder %v1548_v47, 0.0  ;;  %v351_v15 = vadd.f32 %v1176_v37, %v350_v9  ;;  %1181 = vrcp.f32 %v1626_v11 }
 0x13e   :  { %v315_v32 = vsel %vm312_vm10, %v314_v30, %v310_v29  ;;  %v363_v63 = vmul.f32 %v1178_v57, %v1578_v31  ;;  %v340_v49 = vsel %vm1608_vm5, %v1563_v10, %v336_v55  ;;  %v1180_v10 = vpop.eup %1179  ;;  %vm354_vm10 = vmor %vm352_vm7, %vm353_vm8  ;;  %v359_v47 = vor.u32 1.1754944e-38, %v358_v14 }
 0x13f   :  { %v1587_v39 = vsel %vm272_vm13, %v315_v32, 0.0  ;;  %v345_v12 = vsel %vm342_vm6, %v344_v61, %v340_v49  ;;  %v378_v30 = vmul.f32 %v1180_v10, %v1603_v50  ;;  %v355_v32 = vsel %vm354_vm10, %v1176_v37, %v351_v15 }
 0x140   :  { %v364_v17 = vsub.f32 1.0, %v363_v63  ;;  %v1630_v18 = vsel %vm274_vm9, %v345_v12, 0.0  ;;  %vm357_vm11 = vcmp.eq.f32.partialorder %v356_v16, 8.507059e+37  ;;  %vm368_vm13 = vweird.f32 %v1178_v57 }
 0x141   :  { %v459_v40 = vpop.f32.mrf.mxu1  ;;  %v360_v62 = vsel %vm357_vm11, %v359_v47, %v355_v32  ;;  %v373_v34 = vand.u32 2147483648, %v1578_v31  ;;  %v371_v36 = vand.u32 2147483647, %v1578_v31  ;;  %v379_v38 = vsub.f32 1.0, %v378_v30  ;;  %vm369_vm15 = vmor %vm367_vm12, %vm368_vm13  ;;  %v578_v47 = vld [vmem:[#allocation9 + $0x8] sm:$0xff]  ;;  %v577_v30 = vld [vmem:[#allocation9] sm:$0xff] }
 0x142   :  { %v481_v41 = vmul.f32 %v459_v40, %v1587_v39  ;;  %v365_v33 = vmul.f32 %v1178_v57, %v364_v17  ;;  %vm382_vm3 = vweird.f32 %v1603_v50  ;;  %vm383_vm4 = vweird.f32 %v1180_v10 }
 0x143   :  { %v1182_v40 = vpop.eup %1181  ;;  %v374_v46 = vor.u32 1.1754944e-38, %v373_v34  ;;  %vm372_vm2 = vcmp.eq.f32.partialorder %v371_v36, 8.507059e+37  ;;  %v380_v54 = vmul.f32 %v1180_v10, %v379_v38  ;;  %vm276_vm5 = vcmp.gt.f32.partialorder %v1571_v19, 0.0  ;;  %vm384_vm6 = vmor %vm382_vm3, %vm383_vm4 }
 0x144   :  { %1083 = vmatmul.msk.f32.gmra.mxu2 %vm169_vm0, %v481_v41  ;;  %v366_v35 = vadd.f32 %v1178_v57, %v365_v33  ;;  %v1640_v41 = vsel %vm275_vm14, %v360_v62, 0.0  ;;  %v393_v43 = vmul.f32 %v1182_v40, %v1626_v11  ;;  %v388_v52 = vand.u32 2147483648, %v1603_v50 }
 0x145   :  { %v381_v53 = vadd.f32 %v1180_v10, %v380_v54  ;;  %v386_v55 = vand.u32 2147483647, %v1603_v50  ;;  %vm397_vm8 = vweird.f32 %v1626_v11  ;;  %vm398_vm9 = vweird.f32 %v1182_v40 }
 0x146   :  { %v370_v44 = vsel %vm369_vm15, %v1178_v57, %v366_v35  ;;  %v394_v51 = vsub.f32 1.0, %v393_v43  ;;  %vm277_vm10 = vcmp.gt.f32.partialorder %v1592_v48, 0.0  ;;  %v403_v50 = vand.u32 2147483648, %v1626_v11  ;;  %vm399_vm11 = vmor %vm397_vm8, %vm398_vm9 }
 0x147   :  { %v375_v31 = vsel %vm372_vm2, %v374_v46, %v370_v44  ;;  %vm387_vm7 = vcmp.eq.f32.partialorder %v386_v55, 8.507059e+37  ;;  %v401_v49 = vand.u32 2147483647, %v1626_v11  ;;  %vm278_vm13 = vcmp.gt.f32.partialorder %v1617_v8, 0.0  ;;  %v580_v11 = vld [vmem:[#allocation9 + $0x18] sm:$0xff] }
 0x148   :  { %v1649_v56 = vsel %vm276_vm5, %v375_v31, 0.0  ;;  %v395_v61 = vmul.f32 %v1182_v40, %v394_v51  ;;  %v404_v15 = vor.u32 1.1754944e-38, %v403_v50  ;;  %617 = vmatpush.msrb.mxu3 %v580_v11  ;;  %v1164_v8 = vld [vmem:[%s1782_s7] ss:$0 sm:$0xff]  ;;  %vm1047_vm2 = vcmask 7168  }
 0x149   :  { %v462_v60 = vpop.f32.mrf.mxu1  ;;  %vm402_vm12 = vcmp.eq.f32.partialorder %v401_v49, 8.507059e+37  ;;  %v695_v49 = vld [vmem:[#allocation7] sm:$0xff] }
 0x14a   :  { %v482_v42 = vmul.f32 %v462_v60, %v1612_v59  ;;  %v389_v60 = vor.u32 1.1754944e-38, %v388_v52  ;;  %v396_v63 = vadd.f32 %v1182_v40, %v395_v61 }
 0x14c   :  { %1084 = vmatmul.msk.f32.gmra.mxu2 %vm169_vm0, %v482_v42  ;;  %v385_v42 = vsel %vm384_vm6, %v1180_v10, %v381_v53  ;;  %v400_v16 = vsel %vm399_vm11, %v1182_v40, %v396_v63 }
 0x14d   :  { %v390_v19 = vsel %vm387_vm7, %v389_v60, %v385_v42  ;;  %v405_v48 = vsel %vm402_vm12, %v404_v15, %v400_v16 }
 0x14e   :  { %v1657_v9 = vsel %vm277_vm10, %v390_v19, 0.0  ;;  %v1662_v17 = vsel %vm278_vm13, %v405_v48, 0.0 }
 0x151   :  { %v465_v28 = vpop.f32.mrf.mxu1 }
 0x152   :  { %v483_v29 = vmul.f32 %v465_v28, %v1630_v18 }
 0x154   :  { %1085 = vmatmul.msk.f32.gmra.mxu2 %vm169_vm0, %v483_v29  ;;  %v579_v29 = vld [vmem:[#allocation9 + $0x10] sm:$0xff] }
 0x155   :  { %618 = vmatpush.msrb.mxu3 %v579_v29 }
 0x157   :  { %619 = vmatpush.msrb.mxu3 %v578_v47 }
 0x159   :  { %v468_v37 = vpop.f32.mrf.mxu1  ;;  %620 = vmatpush.msrb.mxu3 %v577_v30 }
 0x15a   :  { %v484_v45 = vmul.f32 %v468_v37, %v1640_v41 }
 0x15c   :  { %1086 = vmatmul.msk.f32.gmra.mxu2 %vm169_vm0, %v484_v45 }
 0x161   :  { %v471_v57 = vpop.f32.mrf.mxu1 }
 0x162   :  { %v485_v58 = vmul.f32 %v471_v57, %v1649_v56 }
 0x164   :  { %1087 = vmatmul.msk.f32.gmra.mxu2 %vm169_vm0, %v485_v58 }
 0x169   :  { %v474_v12 = vpop.f32.mrf.mxu1 }
 0x16a   :  { %v486_v14 = vmul.f32 %v474_v12, %v1657_v9 }
 0x16c   :  { %1088 = vmatmul.msk.f32.gmra.mxu2 %vm169_vm0, %v486_v14 }
 0x171   :  { %v477_v10 = vpop.f32.mrf.mxu1 }
 0x172   :  { %v487_v28 = vmul.f32 %v477_v10, %v1662_v17 }
 0x174   :  { %1089 = vmatmul.msk.f32.gmra.mxu2 %vm169_vm0, %v487_v28 }
 0x1bf   :  { %v533_v32 = vpop.f32.mrf.mxu2 }
 0x1c0   :  { %v534_v33 = vadd.f32 %v533_v32, %v1484_v21 }
 0x1c2   :  { %v561_v62 = vadd.f32 %v1164_v8, %v534_v33 }
 0x1c4   :  { %v569_v34 = vmax.f32 %v561_v62, 0.0 }
 0x1c6   :  { %1090 = vmatmul.msk.f32.vlgmr.msrb.gmra.mxu3 %vm169_vm0, %v569_v34 }
 0x1c7   :  { %v536_v35 = vpop.f32.mrf.mxu2 }
 0x1c8   :  { %v537_v36 = vadd.f32 %v536_v35, %v1492_v25  ;;  %v787_v35 = vld [vmem:[#allocation12 + $0x18] sm:$0xff] }
 0x1c9   :  { %824 = vmatpush.msra.mxu3 %v787_v35 }
 0x1ca   :  { %v562_v38 = vadd.f32 %v1164_v8, %v537_v36  ;;  %v786_v36 = vld [vmem:[#allocation12 + $0x10] sm:$0xff] }
 0x1cb   :  { %825 = vmatpush.msra.mxu3 %v786_v36 }
 0x1cc   :  { %v570_v40 = vmax.f32 %v562_v38, 0.0  ;;  %v785_v38 = vld [vmem:[#allocation12 + $0x8] sm:$0xff] }
 0x1cd   :  { %826 = vmatpush.msra.mxu3 %v785_v38 }
 0x1ce   :  { %1091 = vmatmul.msk.f32.gmra.mxu3 %vm169_vm0, %v570_v40 }
 0x1cf   :  { %v539_v37 = vpop.f32.mrf.mxu2 }
 0x1d0   :  { %v540_v45 = vadd.f32 %v539_v37, %v1482_v20 }
 0x1d2   :  { %v563_v46 = vadd.f32 %v1164_v8, %v540_v45 }
 0x1d4   :  { %v571_v43 = vmax.f32 %v563_v46, 0.0  ;;  %v1165_v46 = vld [vmem:[%s1785_s10] ss:$0 sm:$0xff] }
 0x1d6   :  { %1092 = vmatmul.msk.f32.gmra.mxu3 %vm169_vm0, %v571_v43 }
 0x1d7   :  { %v542_v44 = vpop.f32.mrf.mxu2 }
 0x1d8   :  { %v543_v21 = vadd.f32 %v542_v44, %v1488_v23 }
 0x1da   :  { %v564_v54 = vadd.f32 %v1164_v8, %v543_v21 }
 0x1dc   :  { %v572_v31 = vmax.f32 %v564_v54, 0.0 }
 0x1de   :  { %1093 = vmatmul.msk.f32.gmra.mxu3 %vm169_vm0, %v572_v31 }
 0x1df   :  { %v545_v52 = vpop.f32.mrf.mxu2 }
 0x1e0   :  { %v546_v25 = vadd.f32 %v545_v52, %v1496_v27 }
 0x1e2   :  { %v565_v53 = vadd.f32 %v1164_v8, %v546_v25 }
 0x1e4   :  { %v573_v55 = vmax.f32 %v565_v53, 0.0 }
 0x1e6   :  { %1094 = vmatmul.msk.f32.gmra.mxu3 %vm169_vm0, %v573_v55 }
 0x1e7   :  { %v548_v51 = vpop.f32.mrf.mxu2 }
 0x1e8   :  { %v549_v20 = vadd.f32 %v548_v51, %v1486_v22  ;;  %v698_v22 = vld [vmem:[#allocation7 + $0x18] sm:$0xff] }
 0x1e9   :  { %735 = vmatpush.msra.mxu2 %v698_v22 }
 0x1ea   :  { %v566_v57 = vadd.f32 %v1164_v8, %v549_v20 }
 0x1ec   :  { %v574_v58 = vmax.f32 %v566_v57, 0.0 }
 0x1ee   :  { %1095 = vmatmul.msk.f32.gmra.mxu3 %vm169_vm0, %v574_v58 }
 0x1ef   :  { %v551_v60 = vpop.f32.mrf.mxu2 }
 0x1f0   :  { %v552_v23 = vadd.f32 %v551_v60, %v1494_v26  ;;  %v696_v26 = vld [vmem:[#allocation7 + $0x8] sm:$0xff] }
 0x1f2   :  { %v567_v42 = vadd.f32 %v1164_v8, %v552_v23 }
 0x1f4   :  { %v575_v61 = vmax.f32 %v567_v42, 0.0 }
 0x1f6   :  { %1096 = vmatmul.msk.f32.gmra.mxu3 %vm169_vm0, %v575_v61 }
 0x1f7   :  { %v554_v19 = vpop.f32.mrf.mxu2 }
 0x1f8   :  { %v555_v27 = vadd.f32 %v554_v19, %v1490_v24  ;;  %v697_v24 = vld [vmem:[#allocation7 + $0x10] sm:$0xff] }
 0x1f9   :  { %736 = vmatpush.msra.mxu2 %v697_v24 }
 0x1fa   :  { %v568_v50 = vadd.f32 %v1164_v8, %v555_v27 }
 0x1fb   :  { %737 = vmatpush.msra.mxu2 %v696_v26 }
 0x1fc   :  { %v576_v63 = vmax.f32 %v568_v50, 0.0 }
 0x1fd   :  { %738 = vmatpush.msra.mxu2 %v695_v49 }
 0x1fe   :  { %1097 = vmatmul.msk.f32.gmra.mxu3 %vm169_vm0, %v576_v63  ;;  %654 = vmatpush.msrb.mxu0 %v576_v63 }
 0x200   :  { %655 = vmatpush.msrb.mxu0 %v575_v61 }
 0x202   :  { %656 = vmatpush.msrb.mxu0 %v574_v58 }
 0x204   :  { %657 = vmatpush.msrb.mxu0 %v573_v55 }
 0x206   :  { %658 = vmatpush.msrb.mxu0 %v572_v31 }
 0x208   :  { %659 = vmatpush.msrb.mxu0 %v571_v43 }
 0x20a   :  { %660 = vmatpush.msrb.mxu0 %v570_v40  ;;  %v784_v40 = vld [vmem:[#allocation12] sm:$0xff] }
 0x20b   :  { %827 = vmatpush.msra.mxu3 %v784_v40 }
 0x20c   :  { %661 = vmatpush.msrb.mxu0 %v569_v34 }
 0x20d   :  { %1098 = vmatmul.msk.f32.vlgmr.msrb.gmra.mxu0 %vm246_vm1, %v1413_v0 }
 0x215   :  { %1099 = vmatmul.msk.f32.gmra.mxu0 %vm246_vm1, %v1418_v1 }
 0x21d   :  { %1100 = vmatmul.msk.f32.gmra.mxu0 %vm246_vm1, %v1423_v2 }
 0x225   :  { %1101 = vmatmul.msk.f32.gmra.mxu0 %vm246_vm1, %v1428_v3 }
 0x22d   :  { %1102 = vmatmul.msk.f32.gmra.mxu0 %vm246_vm1, %v1433_v4 }
 0x235   :  { %1103 = vmatmul.msk.f32.gmra.mxu0 %vm246_vm1, %v1438_v5 }
 0x23d   :  { %1104 = vmatmul.msk.f32.gmra.mxu0 %vm246_vm1, %v1443_v6 }
 0x245   :  { %1105 = vmatmul.msk.f32.gmra.mxu0 %vm246_vm1, %v1448_v7 }
 0x249   :  { %v622_v37 = vpop.f32.mrf.mxu3 }
 0x251   :  { %v625_v45 = vpop.f32.mrf.mxu3 }
 0x259   :  { %v628_v31 = vpop.f32.mrf.mxu3 }
 0x261   :  { %v631_v51 = vpop.f32.mrf.mxu3 }
 0x269   :  { %v634_v61 = vpop.f32.mrf.mxu3 }
 0x271   :  { %v637_v24 = vpop.f32.mrf.mxu3 }
 0x28a   :  { %v663_v12 = vpop.f32.mrf.mxu0 }
 0x28b   :  { %v687_v14 = vmul.f32 %v663_v12, %v1565_v13 }
 0x28d   :  { %1106 = vmatmul.msk.f32.vlgmr.msra.gmra.mxu2 %vm169_vm0, %v687_v14 }
 0x292   :  { %v666_v15 = vpop.f32.mrf.mxu0 }
 0x293   :  { %v688_v16 = vmul.f32 %v666_v15, %v1587_v39 }
 0x295   :  { %1107 = vmatmul.msk.f32.gmra.mxu2 %vm169_vm0, %v688_v16  ;;  %v640_v16 = vpop.f32.mrf.mxu3 }
 0x29a   :  { %v669_v48 = vpop.f32.mrf.mxu0 }
 0x29b   :  { %v689_v10 = vmul.f32 %v669_v48, %v1612_v59 }
 0x29d   :  { %1108 = vmatmul.msk.f32.gmra.mxu2 %vm169_vm0, %v689_v10 }
 0x2a2   :  { %v672_v28 = vpop.f32.mrf.mxu0 }
 0x2a3   :  { %v690_v11 = vmul.f32 %v672_v28, %v1630_v18 }
 0x2a5   :  { %1109 = vmatmul.msk.f32.gmra.mxu2 %vm169_vm0, %v690_v11 }
 0x2aa   :  { %v675_v29 = vpop.f32.mrf.mxu0 }
 0x2ab   :  { %v691_v47 = vmul.f32 %v675_v29, %v1640_v41  ;;  %v643_v29 = vpop.f32.mrf.mxu3 }
 0x2ad   :  { %1110 = vmatmul.msk.f32.gmra.mxu2 %vm169_vm0, %v691_v47 }
 0x2b2   :  { %v678_v30 = vpop.f32.mrf.mxu0 }
 0x2b3   :  { %v692_v8 = vmul.f32 %v678_v30, %v1649_v56 }
 0x2b5   :  { %1111 = vmatmul.msk.f32.gmra.mxu2 %vm169_vm0, %v692_v8 }
 0x2ba   :  { %v681_v32 = vpop.f32.mrf.mxu0 }
 0x2bb   :  { %v693_v33 = vmul.f32 %v681_v32, %v1657_v9 }
 0x2bd   :  { %1112 = vmatmul.msk.f32.gmra.mxu2 %vm169_vm0, %v693_v33  ;;  %v902_v33 = vld [vmem:[#allocation10] sm:$0xff] }
 0x2c2   :  { %v684_v62 = vpop.f32.mrf.mxu0 }
 0x2c3   :  { %v694_v34 = vmul.f32 %v684_v62, %v1662_v17 }
 0x2c5   :  { %1113 = vmatmul.msk.f32.gmra.mxu2 %vm169_vm0, %v694_v34 }
 0x310   :  { %v740_v43 = vpop.f32.mrf.mxu2 }
 0x311   :  { %v741_v44 = vadd.f32 %v740_v43, %v622_v37  ;;  %v1318_v37 = vmov 0  }
 0x312   :  { %1163 = vset.pattern.permute.xlu0 %v1318_v37  ;;  %1162 = vset.pattern.permute.xlu2 %v1318_v37 }
 0x313   :  { %v768_v21 = vadd.f32 %v1165_v46, %v741_v44 }
 0x315   :  { %v776_v54 = vmax.f32 %v768_v21, 0.0 }
 0x317   :  { %1114 = vmatmul.msk.f32.vlgmr.msra.gmra.mxu3 %vm169_vm0, %v776_v54 }
 0x318   :  { %v743_v52 = vpop.f32.mrf.mxu2 }
 0x319   :  { %v744_v25 = vadd.f32 %v743_v52, %v625_v45 }
 0x31b   :  { %v769_v53 = vadd.f32 %v1165_v46, %v744_v25 }
 0x31d   :  { %v777_v55 = vmax.f32 %v769_v53, 0.0 }
 0x31f   :  { %1115 = vmatmul.msk.f32.gmra.mxu3 %vm169_vm0, %v777_v55 }
 0x320   :  { %v746_v20 = vpop.f32.mrf.mxu2 }
 0x321   :  { %v747_v57 = vadd.f32 %v746_v20, %v628_v31 }
 0x323   :  { %v770_v58 = vadd.f32 %v1165_v46, %v747_v57 }
 0x325   :  { %v778_v60 = vmax.f32 %v770_v58, 0.0 }
 0x327   :  { %1116 = vmatmul.msk.f32.gmra.mxu3 %vm169_vm0, %v778_v60 }
 0x328   :  { %v749_v23 = vpop.f32.mrf.mxu2 }
 0x329   :  { %v750_v42 = vadd.f32 %v749_v23, %v631_v51  ;;  %v1166_v23 = vld [vmem:[%s1788_s13] ss:$0 sm:$0xff] }
 0x32b   :  { %v771_v19 = vadd.f32 %v1165_v46, %v750_v42 }
 0x32d   :  { %v779_v27 = vmax.f32 %v771_v19, 0.0 }
 0x32f   :  { %1117 = vmatmul.msk.f32.gmra.mxu3 %vm169_vm0, %v779_v27 }
 0x330   :  { %v752_v50 = vpop.f32.mrf.mxu2 }
 0x331   :  { %v753_v63 = vadd.f32 %v752_v50, %v634_v61 }
 0x333   :  { %v772_v22 = vadd.f32 %v1165_v46, %v753_v63 }
 0x335   :  { %v780_v26 = vmax.f32 %v772_v22, 0.0  ;;  %v983_v22 = vlaneseq }
 0x337   :  { %1118 = vmatmul.msk.f32.gmra.mxu3 %vm169_vm0, %v780_v26 }
 0x338   :  { %v755_v49 = vpop.f32.mrf.mxu2 }
 0x339   :  { %v756_v12 = vadd.f32 %v755_v49, %v637_v24 }
 0x33b   :  { %v773_v14 = vadd.f32 %v1165_v46, %v756_v12 }
 0x33d   :  { %v781_v15 = vmax.f32 %v773_v14, 0.0  ;;  %v984_v14 = vand.u32 127, %v983_v22 }
 0x33f   :  { %1119 = vmatmul.msk.f32.gmra.mxu3 %vm169_vm0, %v781_v15 }
 0x340   :  { %v758_v48 = vpop.f32.mrf.mxu2 }
 0x341   :  { %v759_v10 = vadd.f32 %v758_v48, %v640_v16 }
 0x343   :  { %v774_v28 = vadd.f32 %v1165_v46, %v759_v10 }
 0x345   :  { %v782_v11 = vmax.f32 %v774_v28, 0.0 }
 0x347   :  { %1120 = vmatmul.msk.f32.gmra.mxu3 %vm169_vm0, %v782_v11 }
 0x348   :  { %v761_v47 = vpop.f32.mrf.mxu2 }
 0x349   :  { %v762_v30 = vadd.f32 %v761_v47, %v643_v29  ;;  %v1319_v47 = vmov 0.0  }
 0x34b   :  { %v775_v8 = vadd.f32 %v1165_v46, %v762_v30 }
 0x34d   :  { %v783_v32 = vmax.f32 %v775_v8, 0.0 }
 0x34f   :  { %1121 = vmatmul.msk.f32.gmra.mxu3 %vm169_vm0, %v783_v32  ;;  %861 = vmatpush.msra.mxu1 %v783_v32 }
 0x351   :  { %862 = vmatpush.msra.mxu1 %v782_v11 }
 0x353   :  { %863 = vmatpush.msra.mxu1 %v781_v15 }
 0x355   :  { %864 = vmatpush.msra.mxu1 %v780_v26 }
 0x357   :  { %865 = vmatpush.msra.mxu1 %v779_v27 }
 0x359   :  { %866 = vmatpush.msra.mxu1 %v778_v60 }
 0x35b   :  { %867 = vmatpush.msra.mxu1 %v777_v55 }
 0x35d   :  { %868 = vmatpush.msra.mxu1 %v776_v54 }
 0x35e   :  { %1122 = vmatmul.msk.f32.vlgmr.msra.gmra.mxu1 %vm246_vm1, %v1413_v0  ;;  %v905_v0 = vld [vmem:[#allocation10 + $0x18] sm:$0xff] }
 0x35f   :  { %942 = vmatpush.msra.mxu0 %v905_v0 }
 0x366   :  { %1123 = vmatmul.msk.f32.gmra.mxu1 %vm246_vm1, %v1418_v1  ;;  %v904_v1 = vld [vmem:[#allocation10 + $0x10] sm:$0xff] }
 0x367   :  { %943 = vmatpush.msra.mxu0 %v904_v1 }
 0x36e   :  { %1124 = vmatmul.msk.f32.gmra.mxu1 %vm246_vm1, %v1423_v2  ;;  %v903_v2 = vld [vmem:[#allocation10 + $0x8] sm:$0xff] }
 0x36f   :  { %944 = vmatpush.msra.mxu0 %v903_v2 }
 0x371   :  { %945 = vmatpush.msra.mxu0 %v902_v33 }
 0x376   :  { %1125 = vmatmul.msk.f32.gmra.mxu1 %vm246_vm1, %v1428_v3 }
 0x37e   :  { %1126 = vmatmul.msk.f32.gmra.mxu1 %vm246_vm1, %v1433_v4 }
 0x386   :  { %1127 = vmatmul.msk.f32.gmra.mxu1 %vm246_vm1, %v1438_v5 }
 0x38e   :  { %1128 = vmatmul.msk.f32.gmra.mxu1 %vm246_vm1, %v1443_v6 }
 0x396   :  { %1129 = vmatmul.msk.f32.gmra.mxu1 %vm246_vm1, %v1448_v7 }
 0x3db   :  { %v870_v3 = vpop.f32.mrf.mxu1 }
 0x3dc   :  { %v894_v4 = vmul.f32 %v870_v3, %v1565_v13 }
 0x3de   :  { %1130 = vmatmul.msk.f32.vlgmr.msra.gmra.mxu0 %vm169_vm0, %v894_v4 }
 0x3e3   :  { %v873_v5 = vpop.f32.mrf.mxu1 }
 0x3e4   :  { %v895_v62 = vmul.f32 %v873_v5, %v1587_v39 }
 0x3e6   :  { %1131 = vmatmul.msk.f32.gmra.mxu0 %vm169_vm0, %v895_v62 }
 0x3eb   :  { %v876_v6 = vpop.f32.mrf.mxu1 }
 0x3ec   :  { %v896_v7 = vmul.f32 %v876_v6, %v1612_v59 }
 0x3ee   :  { %1132 = vmatmul.msk.f32.gmra.mxu0 %vm169_vm0, %v896_v7 }
 0x3f3   :  { %v879_v34 = vpop.f32.mrf.mxu1 }
 0x3f4   :  { %v897_v35 = vmul.f32 %v879_v34, %v1630_v18  ;;  %v991_v18 = vld [vmem:[%s1779_s4] sm:$0xff] }
 0x3f5   :  { %993 = vperm.xlu0 %1163, %v991_v18  }
 0x3f6   :  { %1133 = vmatmul.msk.f32.gmra.mxu0 %vm169_vm0, %v897_v35 }
 0x3fb   :  { %v882_v36 = vpop.f32.mrf.mxu1 }
 0x3fc   :  { %v898_v13 = vmul.f32 %v882_v36, %v1640_v41 }
 0x3fe   :  { %1134 = vmatmul.msk.f32.gmra.mxu0 %vm169_vm0, %v898_v13 }
 0x403   :  { %v885_v38 = vpop.f32.mrf.mxu1 }
 0x404   :  { %v899_v39 = vmul.f32 %v885_v38, %v1649_v56  ;;  %v985_v56 = vld [vmem:[%s1778_s3] sm:$0xff] }
 0x405   :  { %987 = vperm.xlu2 %1162, %v985_v56  }
 0x406   :  { %1135 = vmatmul.msk.f32.gmra.mxu0 %vm169_vm0, %v899_v39 }
 0x40b   :  { %v888_v40 = vpop.f32.mrf.mxu1 }
 0x40c   :  { %v900_v59 = vmul.f32 %v888_v40, %v1657_v9  ;;  %v829_v9 = vpop.f32.mrf.mxu3 }
 0x40e   :  { %1136 = vmatmul.msk.f32.gmra.mxu0 %vm169_vm0, %v900_v59 }
 0x413   :  { %v891_v41 = vpop.f32.mrf.mxu1 }
 0x414   :  { %v901_v45 = vmul.f32 %v891_v41, %v1662_v17  ;;  %v832_v46 = vpop.f32.mrf.mxu3 }
 0x416   :  { %1137 = vmatmul.msk.f32.gmra.mxu0 %vm169_vm0, %v901_v45 }
 0x41c   :  { %v835_v21 = vpop.f32.mrf.mxu3 }
 0x424   :  { %v838_v31 = vpop.f32.mrf.mxu3 }
 0x42c   :  { %v841_v53 = vpop.f32.mrf.mxu3 }
 0x434   :  { %v844_v51 = vpop.f32.mrf.mxu3 }
 0x43c   :  { %v847_v20 = vpop.f32.mrf.mxu3 }
 0x444   :  { %v850_v58 = vpop.f32.mrf.mxu3 }
 0x45b   :  { %v947_v43 = vpop.f32.mrf.mxu0 }
 0x45c   :  { %v948_v44 = vadd.f32 %v947_v43, %v829_v9 }
 0x45e   :  { %v975_v29 = vadd.f32 %v1166_v23, %v948_v44 }
 0x45f   :  { %v988_v10 = vpop.permute.xlu2 %987 }
 0x460   :  { %vm989_vm15 = vcmp.eq.s32.totalorder %v984_v14, %v988_v10 }
 0x461   :  { %v990_v8 = vsel %vm989_vm15, 1.0, %v1319_v47 }
 0x463   :  { %v950_v54 = vpop.f32.mrf.mxu0 }
 0x464   :  { %v951_v15 = vadd.f32 %v950_v54, %v832_v46 }
 0x466   :  { %v976_v11 = vadd.f32 %v1166_v23, %v951_v15 }
 0x467   :  { %v994_v48 = vpop.permute.xlu0 %993 }
 0x468   :  { %vm995_vm14 = vcmp.eq.s32.totalorder %v984_v14, %v994_v48 }
 0x469   :  { %v996_v30 = vsel %vm995_vm14, 1.0, %v1319_v47 }
 0x46b   :  { %v953_v52 = vpop.f32.mrf.mxu0 }
 0x46c   :  { %v954_v49 = vadd.f32 %v953_v52, %v835_v21 }
 0x46e   :  { %v977_v28 = vadd.f32 %v1166_v23, %v954_v49 }
 0x473   :  { %v956_v25 = vpop.f32.mrf.mxu0 }
 0x474   :  { %v957_v24 = vadd.f32 %v956_v25, %v838_v31 }
 0x476   :  { %v978_v16 = vadd.f32 %v1166_v23, %v957_v24 }
 0x47b   :  { %v959_v55 = vpop.f32.mrf.mxu0 }
 0x47c   :  { %v960_v50 = vadd.f32 %v959_v55, %v841_v53 }
 0x47e   :  { %v979_v12 = vadd.f32 %v1166_v23, %v960_v50 }
 0x483   :  { %v962_v17 = vpop.f32.mrf.mxu0 }
 0x484   :  { %v963_v19 = vadd.f32 %v962_v17, %v844_v51 }
 0x486   :  { %v980_v26 = vadd.f32 %v1166_v23, %v963_v19 }
 0x48b   :  { %v965_v57 = vpop.f32.mrf.mxu0 }
 0x48c   :  { %v966_v42 = vadd.f32 %v965_v57, %v847_v20 }
 0x48e   :  { %v981_v63 = vadd.f32 %v1166_v23, %v966_v42 }
 0x493   :  { %v968_v60 = vpop.f32.mrf.mxu0 }
 0x494   :  { %v969_v61 = vadd.f32 %v968_v60, %v850_v58 }
 0x496   :  { %v982_v27 = vadd.f32 %v1166_v23, %v969_v61 }
 0x498   :  { %1008 = vmatpush.msrb.mxu2 %v982_v27  ;;  %1031 = vmatpush.msrb.mxu3 %v982_v27 }
 0x49a   :  { %1009 = vmatpush.msrb.mxu2 %v981_v63  ;;  %1032 = vmatpush.msrb.mxu3 %v981_v63 }
 0x49c   :  { %1010 = vmatpush.msrb.mxu2 %v980_v26  ;;  %1033 = vmatpush.msrb.mxu3 %v980_v26 }
 0x49e   :  { %1011 = vmatpush.msrb.mxu2 %v979_v12  ;;  %1034 = vmatpush.msrb.mxu3 %v979_v12 }
 0x4a0   :  { %1012 = vmatpush.msrb.mxu2 %v978_v16  ;;  %1035 = vmatpush.msrb.mxu3 %v978_v16 }
 0x4a2   :  { %1013 = vmatpush.msrb.mxu2 %v977_v28  ;;  %1036 = vmatpush.msrb.mxu3 %v977_v28 }
 0x4a4   :  { %1014 = vmatpush.msrb.mxu2 %v976_v11  ;;  %1037 = vmatpush.msrb.mxu3 %v976_v11 }
 0x4a6   :  { %1015 = vmatpush.msrb.mxu2 %v975_v29  ;;  %1038 = vmatpush.msrb.mxu3 %v975_v29 }
 0x4a7   :  { %1138 = vmatmul.msk.f32.vlgmr.msrb.gmra.mxu2 %vm246_vm1, %v990_v8  ;;  %1139 = vmatmul.msk.f32.vlgmr.msrb.gmra.mxu3 %vm246_vm1, %v996_v30 }
 0x52a   :  { %v1017_v32 = vpop.f32.mrf.mxu2  ;;  %v1040_v0 = vpop.f32.mrf.mxu3 }
 0x52b   :  { %v1043_v1 = vmul.f32 %v1040_v0, %v1017_v32 }
 0x52d   :  { %v1044_v2 = vsel %vm169_vm0, %v1043_v1, 0.0 }
 0x52e   :  { %1045 = vadd.xlane.f32.xlu1 %v1044_v2 }
 0x5a1   :  { %v1046_v33 = vpop.xlane.xlu1 %1045 }
 0x5a2   :  { %1048 = vst.msk [vmem:[%s1789_s14] sm:$0xff] %vm1047_vm2, %v1046_v33 }
 0x5a3   :  { %1053 = vsyncpa [#allocation6], 1 }
 0x5a4   :  { %1054 = vsyncpa [#allocation8], 1 }
 0x5a5   :  { %1055 = vsyncpa [#allocation11], 1 }
 0x5a6   :  { %1056 = vsyncmov [#allocation3] }
 0x5a9   :  { %s1057_s2 = vpop.sfrf %1056 }
 0x5aa   :  { %p1140_p0 = scmp.ne.s32.totalorder %s1057_s2, 0 }
 0x5ac   :  { %1061 = shalt.err (%p1140_p0)  }

</bundles_post_ra>
